<compile_context>
chip_gen: v6e
topology: v6e:2x2x1
jax: 0.10.0
libtpu: 0.0.40
codegen_flags: <defaults>
</compile_context>

<pallas_src>
import functools

import jax
import jax.numpy as jnp
import numpy as np
from jax import lax
from jax.experimental import pallas as pl
from jax.experimental.pallas import tpu as pltpu

NEG_INF = -1e30


# ----------------------------------------------------------------------------
# PPMConcat pooling (AdaptiveAvgPool2d at several scales, concatenated).
# Returned as averaging weights (Nk, H*W); the kernel uses a 0/1 indicator
# plus an exact f32 1/count row so the bf16 matmul does not quantize 1/9 etc.
# ----------------------------------------------------------------------------
def build_ppm_matrix(H, W, pool_scales):
    rows = []
    for s in pool_scales:
        for i in range(s):
            r0 = (i * H) // s
            r1 = ((i + 1) * H + s - 1) // s
            for j in range(s):
                c0 = (j * W) // s
                c1 = ((j + 1) * W + s - 1) // s
                m = np.zeros((H, W), np.float32)
                m[r0:r1, c0:c1] = 1.0 / float((r1 - r0) * (c1 - c0))
                rows.append(m.reshape(-1))
    return np.stack(rows, axis=0)  # (Nk, H*W)


# ----------------------------------------------------------------------------
# Pass 1: pooled key/value. grid = (B, NT); NT is the reduction axis.
# ----------------------------------------------------------------------------
def pool_kernel(x_ref, wkqv_ref, qb_ref, pt_ref, inv_ref, kv_ref, acc_ref, *, ct):
    nt = pl.program_id(1)

    @pl.when(nt == 0)
    def _init():
        acc_ref[...] = jnp.zeros_like(acc_ref)

    x = x_ref[0]                                                        # (C_in, TN) bf16
    # Fused key/query + value projection (BN scale and sqrt(matmul_norm)
    # pre-folded into the q rows host-side).
    qv = jnp.dot(wkqv_ref[...], x, preferred_element_type=jnp.float32)  # (2Ct, TN) f32
    q16 = jnp.maximum(qv[:ct] + qb_ref[...], 0.0).astype(jnp.bfloat16)  # BN bias + ReLU
    v16 = qv[ct:].astype(jnp.bfloat16)
    qv16 = jnp.concatenate([q16, v16], axis=0)                          # (2Ct, TN)

    # Single fused pooling matmul against the 0/1 indicator tile.
    acc_ref[...] += jnp.dot(qv16, pt_ref[...], preferred_element_type=jnp.float32)

    @pl.when(nt == pl.num_programs(1) - 1)
    def _finalize():
        # Exact averaging: multiply by f32 1/count (zero on padded columns).
        kv_ref[0] = (acc_ref[...] * inv_ref[...]).astype(kv_ref.dtype)


# ----------------------------------------------------------------------------
# Pass 2: attention + bottleneck per N tile. grid = (B, NT), both parallel.
# ----------------------------------------------------------------------------
def attn_kernel(x_ref, wqf_ref, qb_ref, kv_ref, wbc_ref, bb_ref, mask_ref,
                out_ref, *, ct, use_bf16_exp):
    x = x_ref[0]                                                        # (C_in, TN) bf16
    # One stacked matmul: rows [0:Ct] -> query, rows [Ct:] -> bottleneck feats
    # branch (wb_feat * b_scale pre-folded host-side).
    qf = jnp.dot(wqf_ref[...], x, preferred_element_type=jnp.float32)   # (Ct+C_out, TN)
    q16 = jnp.maximum(qf[:ct] + qb_ref[...], 0.0).astype(jnp.bfloat16)  # (Ct, TN)
    feats = qf[ct:]                                                     # (C_out, TN) f32

    kv = kv_ref[0]                                                      # (2Ct, Nk_pad) bf16
    k16 = kv[:ct]
    v16 = kv[ct:]

    # sim = Q^T K (matmul_norm already folded); contract channel axes directly.
    sim = lax.dot_general(q16, k16, (((0,), (0,)), ((), ())),
                          preferred_element_type=jnp.float32)           # (TN, Nk_pad)
    sim = sim + mask_ref[...]                                           # -inf on pads
    sim = sim - jnp.max(sim, axis=-1, keepdims=True)

    if use_bf16_exp:
        # v6e/v7x: bf16-capable EUP (~2x exp throughput); row-sum/recip in f32.
        p = jnp.exp(sim.astype(jnp.bfloat16))
        denom = jnp.sum(p.astype(jnp.float32), axis=-1, keepdims=True)
        attn16 = p * pl.reciprocal(denom, approx=True).astype(jnp.bfloat16)
    else:
        # v5e and older: no bf16 EUP, keep softmax math in f32.
        p = jnp.exp(sim)
        denom = jnp.sum(p, axis=-1, keepdims=True)
        attn16 = (p * pl.reciprocal(denom, approx=True)).astype(jnp.bfloat16)

    # context = V_pool @ attn^T (rhs contraction, no explicit transpose).
    ctx = lax.dot_general(v16, attn16, (((1,), (1,)), ((), ())),
                          preferred_element_type=jnp.float32)           # (Ct, TN)

    # Bottleneck ctx branch with out_project folded in: (C_out, Ct) @ (Ct, TN).
    bott = jnp.dot(wbc_ref[...], ctx.astype(jnp.bfloat16),
                   preferred_element_type=jnp.float32) + feats
    out_ref[0] = jnp.maximum(bott + bb_ref[...], 0.0).astype(out_ref.dtype)


# ----------------------------------------------------------------------------
# Host wrapper: exact host-side folds + two pallas_calls.
# ----------------------------------------------------------------------------
def apn_block_pallas(x_nchw, params, pool_mat, *, out_dtype=jnp.bfloat16):
    B, C_in, H, W = x_nchw.shape
    N = H * W
    Ct = params["w_kq"].shape[0]
    C_out = params["w_out"].shape[0]
    Nk = pool_mat.shape[0]
    Nk_pad = max(128, ((Nk + 127) // 128) * 128)     # lane-dense pooled axis

    kind = jax.devices()[0].device_kind.lower()
    is_new_gen = ("v6" in kind) or ("v7" in kind) or ("7x" in kind)
    use_bf16_exp = is_new_gen                        # never on v5e/older

    # N tile: smaller on v7x (64 MiB VMEM / TC), larger on v5e/v6e (128 MiB).
    prefs = (512, 256, 128) if ("v7" in kind or "7x" in kind) else (1024, 512, 256, 128)
    TN = N
    for t in prefs:
        if N % t == 0:
            TN = t
            break
    NT = N // TN
    vmem_limit = 48 * 1024 * 1024

    # ---- exact host-side algebraic folds ------------------------------------
    c = float(Ct) ** -0.25                            # sqrt of Ct^-0.5 (applied via q twice)
    w_q = params["w_kq"] * params["kq_scale"] * c     # BN scale + sqrt(matmul_norm)
    q_b = (params["kq_bias"] * c).astype(jnp.float32)
    w_kqv = jnp.concatenate([w_q, params["w_v"]], axis=0)            # (2Ct, C_in)

    wb = params["w_bottleneck"]                                       # (C_out, C_out+C_in)
    wb_ctx = wb[:, :C_out] * params["b_scale"]
    wb_feat = wb[:, C_out:] * params["b_scale"]
    wbc = wb_ctx @ params["w_out"]                                    # out_project folded: (C_out, Ct)
    w_qf = jnp.concatenate([w_q, wb_feat], axis=0)                    # (Ct+C_out, C_in)

    # Pooling indicator (exact 0/1 in bf16) + exact f32 1/count + pad mask.
    pm = np.asarray(pool_mat, np.float32)
    ind = (pm > 0.0).astype(np.float32)                               # (Nk, N)
    counts = ind.sum(axis=1)
    pt_np = np.zeros((N, Nk_pad), np.float32)
    pt_np[:, :Nk] = ind.T
    inv_np = np.zeros((1, Nk_pad), np.float32)
    inv_np[0, :Nk] = 1.0 / counts
    mask_np = np.full((1, Nk_pad), NEG_INF, np.float32)
    mask_np[0, :Nk] = 0.0

    pt = jnp.asarray(pt_np, jnp.bfloat16)
    inv = jnp.asarray(inv_np, jnp.float32)
    mask = jnp.asarray(mask_np, jnp.float32)

    x = x_nchw.reshape(B, C_in, N).astype(jnp.bfloat16)

    # ---- pass 1: pooled key/value -------------------------------------------
    pool_flops = B * (2 * (2 * Ct) * C_in * N + 2 * (2 * Ct) * N * Nk_pad)
    kv_pool = pl.pallas_call(
        functools.partial(pool_kernel, ct=Ct),
        out_shape=jax.ShapeDtypeStruct((B, 2 * Ct, Nk_pad), jnp.bfloat16),
        grid_spec=pltpu.PrefetchScalarGridSpec(
            num_scalar_prefetch=0,
            grid=(B, NT),
            in_specs=[
                pl.BlockSpec((1, C_in, TN), lambda b, n: (b, 0, n)),
                pl.BlockSpec((2 * Ct, C_in), lambda b, n: (0, 0)),
                pl.BlockSpec((Ct, 1), lambda b, n: (0, 0)),
                pl.BlockSpec((TN, Nk_pad), lambda b, n: (n, 0)),
                pl.BlockSpec((1, Nk_pad), lambda b, n: (0, 0)),
            ],
            out_specs=pl.BlockSpec((1, 2 * Ct, Nk_pad), lambda b, n: (b, 0, 0)),
            scratch_shapes=[pltpu.VMEM((2 * Ct, Nk_pad), jnp.float32)],
        ),
        compiler_params=pltpu.CompilerParams(
            dimension_semantics=("parallel", "arbitrary"),
            vmem_limit_bytes=vmem_limit),
        cost_estimate=pl.CostEstimate(
            flops=pool_flops, transcendentals=0,
            bytes_accessed=x.size * 2 + pt.size * 2 + B * 2 * Ct * Nk_pad * 2),
    )(x, w_kqv.astype(jnp.bfloat16), q_b, pt, inv)

    # ---- pass 2: attention + bottleneck per N tile ---------------------------
    attn_flops = B * (2 * (Ct + C_out) * C_in * N
                      + 2 * 2 * N * Ct * Nk_pad
                      + 2 * C_out * Ct * N)
    out = pl.pallas_call(
        functools.partial(attn_kernel, ct=Ct, use_bf16_exp=use_bf16_exp),
        out_shape=jax.ShapeDtypeStruct((B, C_out, N), out_dtype),
        grid_spec=pltpu.PrefetchScalarGridSpec(
            num_scalar_prefetch=0,
            grid=(B, NT),
            in_specs=[
                pl.BlockSpec((1, C_in, TN), lambda b, n: (b, 0, n)),
                pl.BlockSpec((Ct + C_out, C_in), lambda b, n: (0, 0)),
                pl.BlockSpec((Ct, 1), lambda b, n: (0, 0)),
                pl.BlockSpec((1, 2 * Ct, Nk_pad), lambda b, n: (b, 0, 0)),
                pl.BlockSpec((C_out, Ct), lambda b, n: (0, 0)),
                pl.BlockSpec((C_out, 1), lambda b, n: (0, 0)),
                pl.BlockSpec((1, Nk_pad), lambda b, n: (0, 0)),
            ],
            out_specs=pl.BlockSpec((1, C_out, TN), lambda b, n: (b, 0, n)),
        ),
        compiler_params=pltpu.CompilerParams(
            dimension_semantics=("parallel", "parallel"),
            vmem_limit_bytes=vmem_limit),
        cost_estimate=pl.CostEstimate(
            flops=attn_flops, transcendentals=B * N * Nk_pad,
            bytes_accessed=x.size * 2
            + B * C_out * N * jnp.dtype(out_dtype).itemsize),
    )(x, w_qf.astype(jnp.bfloat16), q_b, kv_pool,
      wbc.astype(jnp.bfloat16), params["b_bias"].astype(jnp.float32), mask)

    return out.reshape(B, C_out, H, W)


# ----------------------------------------------------------------------------
# Pure-JAX f32 reference (mirrors the PyTorch forward) for a correctness check.
# ----------------------------------------------------------------------------
def apn_block_reference(x_nchw, params, pool_mat):
    B, C_in, H, W = x_nchw.shape
    Ct = params["w_kq"].shape[0]
    x = x_nchw.reshape(B, C_in, H * W).astype(jnp.float32)
    q = jnp.einsum("tc,bcn->btn", params["w_kq"], x)
    q = jnp.maximum(q * params["kq_scale"][None] + params["kq_bias"][None], 0.0)
    v = jnp.einsum("tc,bcn->btn", params["w_v"], x)
    Pm = jnp.asarray(pool_mat, jnp.float32)
    k_pool = jnp.einsum("btn,mn->btm", q, Pm)
    v_pool = jnp.einsum("btn,mn->btm", v, Pm)
    sim = jnp.einsum("btn,btm->bnm", q, k_pool) * (float(Ct) ** -0.5)
    attn = jax.nn.softmax(sim, axis=-1)
    ctx = jnp.einsum("bnm,btm->btn", attn, v_pool)
    prior = jnp.einsum("ot,btn->bon", params["w_out"], ctx)
    cat = jnp.concatenate([prior, x], axis=1)
    bott = jnp.einsum("oc,bcn->bon", params["w_bottleneck"], cat)
    bott = jnp.maximum(bott * params["b_scale"][None] + params["b_bias"][None], 0.0)
    return bott.reshape(B, -1, H, W)


# ----------------------------------------------------------------------------
# Deterministic parameter construction (BatchNorm folded to scale/bias).
# ----------------------------------------------------------------------------
def make_params(key, in_channels, transform_channels, out_channels):
    ks = jax.random.split(key, 10)

    def bn_fold(k, ch):
        k1, k2, k3, k4 = jax.random.split(k, 4)
        gamma = 1.0 + 0.1 * jax.random.normal(k1, (ch,), jnp.float32)
        beta = 0.1 * jax.random.normal(k2, (ch,), jnp.float32)
        mean = 0.1 * jax.random.normal(k3, (ch,), jnp.float32)
        var = 1.0 + 0.1 * jnp.abs(jax.random.normal(k4, (ch,), jnp.float32))
        scale = gamma / jnp.sqrt(var + 1e-5)
        bias = beta - mean * scale
        return scale.reshape(ch, 1), bias.reshape(ch, 1)

    kq_scale, kq_bias = bn_fold(ks[0], transform_channels)
    b_scale, b_bias = bn_fold(ks[1], out_channels)
    return {
        "w_kq": 0.1 * jax.random.normal(ks[2], (transform_channels, in_channels), jnp.float32),
        "kq_scale": kq_scale, "kq_bias": kq_bias,
        "w_v": 0.1 * jax.random.normal(ks[3], (transform_channels, in_channels), jnp.float32),
        "w_out": 0.1 * jax.random.normal(ks[4], (out_channels, transform_channels), jnp.float32),
        "w_bottleneck": 0.1 * jax.random.normal(
            ks[5], (out_channels, out_channels + in_channels), jnp.float32),
        "b_scale": b_scale, "b_bias": b_bias,
    }


if __name__ == "__main__":
    B, C_in, H, W = 2, 32, 16, 16
    transform_channels, C_out = 16, 32
    key_pool_scales = (1, 3, 6, 8)   # Nk = 1 + 9 + 36 + 64 = 110 (padded to 128)

    key = jax.random.PRNGKey(0)
    kx, kp = jax.random.split(key)
    x = jax.random.normal(kx, (B, C_in, H, W), jnp.float32)
    params = make_params(kp, C_in, transform_channels, C_out)
    pool_mat = build_ppm_matrix(H, W, key_pool_scales)

    out = apn_block_pallas(x, params, pool_mat)
    out = jax.block_until_ready(out)

    ref = apn_block_reference(x, params, pool_mat)
    out_f32 = np.asarray(jnp.asarray(out, jnp.float32))
    ref_f32 = np.asarray(ref)
    # bf16 matmul operands, bf16 exp (v6e/v7x) and bf16 output -> relaxed tol.
    if not np.allclose(out_f32, ref_f32, atol=6e-2, rtol=6e-2):
        err = float(np.max(np.abs(out_f32 - ref_f32)))
        raise AssertionError(f"Pallas kernel output mismatch (max abs err {err})")

    print("KERNEL_OK")
</pallas_src>

<mosaic_0001>
module attributes {stable_mosaic.version = 11 : i64} {
  func.func @pool_kernel(%arg0: i32, %arg1: i32, %arg2: memref<1x32x256xbf16, #tpu.memory_space<vmem>>, %arg3: memref<32x32xbf16, #tpu.memory_space<vmem>>, %arg4: memref<16x1xf32, #tpu.memory_space<vmem>>, %arg5: memref<256x128xbf16, #tpu.memory_space<vmem>>, %arg6: memref<1x128xf32, #tpu.memory_space<vmem>>, %arg7: memref<1x32x128xbf16, #tpu.memory_space<vmem>>, %arg8: memref<32x128xf32, #tpu.memory_space<vmem>>) attributes {dimension_semantics = [#tpu.dimension_semantics<parallel>, #tpu.dimension_semantics<arbitrary>], iteration_bounds = array<i64: 2, 1>, scalar_prefetch = 0 : i64, scratch_operands = 1 : i64, tpu.core_type = #tpu.core_type<tc>, window_params = [{transform_indices = @transform_0, window_bounds = array<i64: 1, 32, 256>}, {pipeline_mode = #tpu.pipeline_mode<synchronous>, transform_indices = @transform_1, window_bounds = array<i64: 32, 32>}, {pipeline_mode = #tpu.pipeline_mode<synchronous>, transform_indices = @transform_2, window_bounds = array<i64: 16, 1>}, {transform_indices = @transform_3, window_bounds = array<i64: 256, 128>}, {pipeline_mode = #tpu.pipeline_mode<synchronous>, transform_indices = @transform_4, window_bounds = array<i64: 1, 128>}, {transform_indices = @transform_5, window_bounds = array<i64: 1, 32, 128>}]} {
    %c0_i32 = arith.constant 0 : i32
    %0 = arith.cmpi eq, %arg1, %c0_i32 : i32
    %1 = arith.extui %0 : i1 to i32
    %c0_i32_0 = arith.constant 0 : i32
    %2 = arith.cmpi ne, %1, %c0_i32_0 : i32
    scf.if %2 {
      %cst_17 = arith.constant 0.000000e+00 : f32
      %25 = vector.broadcast %cst_17 : f32 to vector<32x128xf32>
      %c0_18 = arith.constant 0 : index
      %c0_19 = arith.constant 0 : index
      %26 = vector.load %arg8[%c0_18, %c0_19] : memref<32x128xf32, #tpu.memory_space<vmem>>, vector<32x128xf32>
      tpu.vector_store %arg8[%c0_18, %c0_19], %25 {strides = array<i32>} : memref<32x128xf32, #tpu.memory_space<vmem>>, vector<32x128xf32>,
    } else {
    }
    %c0 = arith.constant 0 : index
    %c0_1 = arith.constant 0 : index
    %c0_2 = arith.constant 0 : index
    %3 = vector.load %arg2[%c0, %c0_1, %c0_2] : memref<1x32x256xbf16, #tpu.memory_space<vmem>>, vector<1x32x256xbf16>
    %4 = vector.shape_cast %3 : vector<1x32x256xbf16> to vector<32x256xbf16>
    %c0_3 = arith.constant 0 : index
    %c0_4 = arith.constant 0 : index
    %5 = vector.load %arg3[%c0_3, %c0_4] : memref<32x32xbf16, #tpu.memory_space<vmem>>, vector<32x32xbf16>
    %cst = arith.constant dense<0.000000e+00> : vector<32x256xf32>
    %6 = tpu.matmul %5, %4, %cst {dimension_numbers = #tpu.dot_dimension_numbers<[1], [0], [0], [1], [0, 0, 1, 1], [], []>} : vector<32x32xbf16>, vector<32x256xbf16>, vector<32x256xf32> -> vector<32x256xf32>
    %7 = vector.extract_strided_slice %6 {offsets = [0, 0], sizes = [16, 256], strides = [1, 1]} : vector<32x256xf32> to vector<16x256xf32>
    %c0_5 = arith.constant 0 : index
    %c0_6 = arith.constant 0 : index
    %8 = vector.load %arg4[%c0_5, %c0_6] : memref<16x1xf32, #tpu.memory_space<vmem>>, vector<16x1xf32>
    %9 = vector.broadcast %8 : vector<16x1xf32> to vector<16x256xf32>
    %10 = arith.addf %7, %9 : vector<16x256xf32>
    %cst_7 = arith.constant 0.000000e+00 : f32
    %11 = vector.broadcast %cst_7 : f32 to vector<16x256xf32>
    %12 = arith.maximumf %10, %11 : vector<16x256xf32>
    %13 = arith.truncf %12 : vector<16x256xf32> to vector<16x256xbf16>
    %14 = vector.extract_strided_slice %6 {offsets = [16, 0], sizes = [16, 256], strides = [1, 1]} : vector<32x256xf32> to vector<16x256xf32>
    %15 = arith.truncf %14 : vector<16x256xf32> to vector<16x256xbf16>
    %16 = tpu.concatenate %13, %15 in 0 : vector<16x256xbf16>, vector<16x256xbf16> -> vector<32x256xbf16>
    %c0_8 = arith.constant 0 : index
    %c0_9 = arith.constant 0 : index
    %17 = vector.load %arg8[%c0_8, %c0_9] : memref<32x128xf32, #tpu.memory_space<vmem>>, vector<32x128xf32>
    %c0_10 = arith.constant 0 : index
    %c0_11 = arith.constant 0 : index
    %18 = vector.load %arg5[%c0_10, %c0_11] : memref<256x128xbf16, #tpu.memory_space<vmem>>, vector<256x128xbf16>
    %cst_12 = arith.constant dense<0.000000e+00> : vector<32x128xf32>
    %19 = tpu.matmul %16, %18, %cst_12 {dimension_numbers = #tpu.dot_dimension_numbers<[1], [0], [0], [1], [0, 0, 1, 1], [], []>} : vector<32x256xbf16>, vector<256x128xbf16>, vector<32x128xf32> -> vector<32x128xf32>
    %20 = arith.addf %17, %19 : vector<32x128xf32>
    %c0_13 = arith.constant 0 : index
    %c0_14 = arith.constant 0 : index
    %21 = vector.load %arg8[%c0_13, %c0_14] : memref<32x128xf32, #tpu.memory_space<vmem>>, vector<32x128xf32>
    tpu.vector_store %arg8[%c0_13, %c0_14], %20 {strides = array<i32>} : memref<32x128xf32, #tpu.memory_space<vmem>>, vector<32x128xf32>,
    %c0_i32_15 = arith.constant 0 : i32
    %22 = arith.cmpi eq, %arg1, %c0_i32_15 : i32
    %23 = arith.extui %22 : i1 to i32
    %c0_i32_16 = arith.constant 0 : i32
    %24 = arith.cmpi ne, %23, %c0_i32_16 : i32
    scf.if %24 {
      %c0_17 = arith.constant 0 : index
      %c0_18 = arith.constant 0 : index
      %25 = vector.load %arg8[%c0_17, %c0_18] : memref<32x128xf32, #tpu.memory_space<vmem>>, vector<32x128xf32>
      %c0_19 = arith.constant 0 : index
      %c0_20 = arith.constant 0 : index
      %26 = vector.load %arg6[%c0_19, %c0_20] : memref<1x128xf32, #tpu.memory_space<vmem>>, vector<1x128xf32>
      %27 = vector.broadcast %26 : vector<1x128xf32> to vector<32x128xf32>
      %28 = arith.mulf %25, %27 : vector<32x128xf32>
      %29 = arith.truncf %28 : vector<32x128xf32> to vector<32x128xbf16>
      %c0_21 = arith.constant 0 : index
      %c0_22 = arith.constant 0 : index
      %c0_23 = arith.constant 0 : index
      %30 = vector.load %arg7[%c0_21, %c0_22, %c0_23] : memref<1x32x128xbf16, #tpu.memory_space<vmem>>, vector<1x32x128xbf16>
      %31 = vector.shape_cast %30 : vector<1x32x128xbf16> to vector<32x128xbf16>
      %32 = vector.shape_cast %29 : vector<32x128xbf16> to vector<1x32x128xbf16>
      tpu.vector_store %arg7[%c0_21, %c0_22, %c0_23], %32 {strides = array<i32>} : memref<1x32x128xbf16, #tpu.memory_space<vmem>>, vector<1x32x128xbf16>,
    } else {
    }
    return
  }
  func.func @transform_0(%arg0: i32, %arg1: i32) -> (i32, i32, i32) {
    %c0_i32 = arith.constant 0 : i32
    %c0_i32_0 = arith.constant 0 : i32
    return %arg0, %c0_i32, %arg1 : i32, i32, i32
  }
  func.func @transform_1(%arg0: i32, %arg1: i32) -> (i32, i32) {
    %c0_i32 = arith.constant 0 : i32
    %c0_i32_0 = arith.constant 0 : i32
    %c0_i32_1 = arith.constant 0 : i32
    return %c0_i32, %c0_i32_0 : i32, i32
  }
  func.func @transform_2(%arg0: i32, %arg1: i32) -> (i32, i32) {
    %c0_i32 = arith.constant 0 : i32
    %c0_i32_0 = arith.constant 0 : i32
    %c0_i32_1 = arith.constant 0 : i32
    return %c0_i32, %c0_i32_0 : i32, i32
  }
  func.func @transform_3(%arg0: i32, %arg1: i32) -> (i32, i32) {
    %c0_i32 = arith.constant 0 : i32
    %c0_i32_0 = arith.constant 0 : i32
    return %arg1, %c0_i32 : i32, i32
  }
  func.func @transform_4(%arg0: i32, %arg1: i32) -> (i32, i32) {
    %c0_i32 = arith.constant 0 : i32
    %c0_i32_0 = arith.constant 0 : i32
    %c0_i32_1 = arith.constant 0 : i32
    return %c0_i32, %c0_i32_0 : i32, i32
  }
  func.func @transform_5(%arg0: i32, %arg1: i32) -> (i32, i32, i32) {
    %c0_i32 = arith.constant 0 : i32
    %c0_i32_0 = arith.constant 0 : i32
    %c0_i32_1 = arith.constant 0 : i32
    return %arg0, %c0_i32, %c0_i32_0 : i32, i32, i32
  }
}

</mosaic_0001>

<bundles_post_ra>
// kernel: tpu_custom_call.1
= control target key start
LH: loop header
LB: loop body
LE: loop exit
PB: predicated region body
PF: predicated region fallthrough
CT: control target
= control target key end

     0   :  { %s1327_s0 = inlined_call_operand.hbm [shape: bf16[2,32,256], index: 0, kind: input, shape index: {}]   ;;  %s1328_s1 = inlined_call_operand.vmem [shape: bf16[32,32], index: 1, kind: input, shape index: {}]   ;;  %s1329_s2 = inlined_call_operand.vmem [shape: f32[16,1], index: 2, kind: input, shape index: {}]   ;;  %s1330_s3 = inlined_call_operand.hbm [shape: bf16[256,128], index: 3, kind: input, shape index: {}]   ;;  %s1331_s4 = inlined_call_operand.vmem [shape: f32[1,128], index: 4, kind: input, shape index: {}]   ;;  %s1332_s5 = inlined_call_operand.hbm [shape: bf16[2,32,128], index: 5, kind: output, shape index: {}]  }
   0x1   :  { %1335 = sst [smem:[#allocation13_spill]] %s1330_s3 }
   0x2   :  { %10 = vsyncpa [#allocation4], 0 }
   0x3   :  { %12 = vsyncpa [#allocation4 + $0x1], 0 }
   0x4   :  { %13 = vsyncpa [#allocation7], 0 }
   0x5   :  { %14 = vsyncpa [#allocation5], 0 }
   0x6   :  { %16 = vsyncpa [#allocation5 + $0x1], 0  ;;  %s1128_s18 = smov 0   ;;  %s1130_s19 = smov 0  }
   0x7   :  { %s1132_s20 = smov 0   ;;  %s1134_s21 = smov 0  }
   0x8   :  { %s1136_s22 = smov 0   ;;  %s1138_s23 = smov 0  }
   0x9 LB: > { %s752_s24 = sadd.s32 4294967295, %s1086_s23   ;;  %s753_s25 = sadd.s32 4294967294, %s1086_s23   ;;  %s1086_s23 = sphi %s1138_s23, %s22_s23   ;;  %s1082_s22 = sphi %s1136_s22, %s1355_s22   ;;  %s1078_s21 = sphi %s1134_s21, %s1354_s21   ;;  %s1074_s20 = sphi %s1132_s20, %s1353_s20   ;;  %s1070_s19 = sphi %s1130_s19, %s1352_s19   ;;  %s1066_s18 = sphi %s1128_s18, %s1351_s18  }
   0xa   : > { %p56_p0 = scmp.ne.s32.totalorder %s1070_s19, %s1066_s18  ;;  %p1162_p1 = scmp.eq.s32.totalorder %s752_s24, 0 }
   0xb   : > { %p1166_p2 = scmp.eq.s32.totalorder %s752_s24, 1  ;;  %p175_p3 = scmp.eq.s32.totalorder %s753_s25, 1 }
   0xc   : > { %p1172_p4 = por %p1162_p1, %p56_p0  ;;  %p754_p5 = scmp.ge.s32.totalorder %s1086_s23, 1 }
   0xd   : > { %p1177_p6 = por %p175_p3, %p56_p0  ;;  %p182_p7 = scmp.lt.s32.totalorder %s1086_s23, 3 }
   0xe   : > { %s1338_s28 = scalar_select %p1172_p4, 1, 0 }
   0xf   : > { %s1339_s29 = scalar_select %p1177_p6, 1, 0 }
  0x10   : > { %p1182_p8 = pnand %p754_p5, %p182_p7  ;;  %s1088_s6 = smov [#allocation6]  }
  0x11   : > { %s203_s7 = sshll.u32 %s1088_s6, 4  ;;  %s34_s9 = sadd.s32 1, %s1082_s22  ;;  %s204_s7 = int_to_ptr.vmem [resolvable:$true] %s203_s7 }
  0x12   : > { %p851_p9 = pneg %p1182_p8  ;;  %s959_s10 = scalar_lea.vmem %s204_s7, 2048 }
  0x13   : > { %p960_p13 = scmp.ne.s32.totalorder %s204_s7, %s959_s10  ;;  %p967_p5 = scmp.lt.s32.totalorder %s204_s7, %s204_s7 }
  0x14   : > { %p1191_p11 = pnand %p851_p9, %p1162_p1  ;;  %p968_p7 = scmp.lt.s32.totalorder %s959_s10, %s959_s10 }
  0x16   : > { %p950_p12 = pneg %p1191_p11  ;;  %p969_p6 = por %p968_p7, %p967_p5 }
  0x18   : > { %p962_p0 = pnand %p960_p13, %p950_p12 }
  0x1a   : > { %p963_p3 = pneg %p962_p0 }
  0x1c   : > { %p970_p4 = pnand %p969_p6, %p963_p3 }
  0x1e   : > { %973 = shalt.err (!%p970_p4)
}
  0x1f   : > { %s1089_s11 = smov 64   ;;  %s1090_s12 = smov 4  }
  0x20   : > { %s1342_s3 = sld [smem:[#allocation13_spill]]  ;;  %p36_p6 = scmp.ge.s32.totalorder %s34_s9, 2 }
  0x21   : > { %s43_s15 = sadd.s32 1, %s1074_s20  ;;  %p50_p4 = scmp.ne.s32.totalorder %s1074_s20, %s1070_s19 }
  0x22   : > { %p51_p9 = scmp.eq.s32.totalorder %s1086_s23, 0  ;;  %s1357_s9 = smov (%p36_p6, %s34_s9), 0 }
  0x23   : > { %1343 = sst [smem:[#allocation12_spill]] %s1357_s9  ;;  %p1215_p13 = por %p1166_p2, %p50_p4 }
  0x24   : > { %p1209_p12 = por %p51_p9, %p50_p4  ;;  %s38_s24 = ssub.s32 %s1082_s22, %s1357_s9 }
  0x25   : > { %p864_p0 = scmp.lt.s32.totalorder %s1086_s23, 2  ;;  %s220_s25 = sand.u32 1, %s1074_s20  }
  0x26   : > { %854 = dma.hbm_to_vmem [thread:$0]  (!%p1191_p11), %s1342_s3, 2048, %s204_s7, [#allocation7], %s1089_s11, %s1089_s11, %s1090_s12  }
  0x27   : > { %p41_p11 = scmp.eq.s32.totalorder %s38_s24, 0  ;;  %s757_s6 = sshll.u32 %s220_s25, 5 }
  0x28   : > { %s798_s8 = sshll.u32 %s1082_s22, 9  ;;  %s224_s13 = scalar_lea.vmem [#allocation3], %s757_s6 }
  0x29   : > { %s1224_s7 = scalar_select %p41_p11, %s1074_s20, %s43_s15  }
  0x2a   : > { %s232_s12 = scalar_lea.hbm %s1327_s0, %s798_s8  ;;  %s233_s14 = sshll.u32 %s224_s13, 4  ;;  %s234_s14 = int_to_ptr.vmem [resolvable:$true] %s233_s14 }
  0x2b   : > { %p1232_p2 = pnand %p864_p0, %p1209_p12  ;;  %s221_s3 = scalar_lea.sflag [#allocation4], %s220_s25 }
  0x2c   : > { %s987_s24 = scalar_lea.vmem %s234_s14, 512  ;;  %s1091_s15 = smov [#allocation3]  }
  0x2d   : > { %p976_p3 = pneg %p1232_p2  ;;  %p988_p5 = scmp.ne.s32.totalorder %s234_s14, %s987_s24 }
  0x2e   : > { %s992_s9 = sshll.u32 %s1091_s15, 4  ;;  %s993_s9 = int_to_ptr.vmem [resolvable:$false] %s992_s9 }
  0x2f   : > { %p990_p7 = pnand %p988_p5, %p976_p3  ;;  %s994_s8 = scalar_lea.vmem %s993_s9, 1024 }
  0x30   : > { %p995_p4 = scmp.lt.s32.totalorder %s234_s14, %s993_s9  ;;  %p996_p9 = scmp.lt.s32.totalorder %s994_s8, %s987_s24 }
  0x31   : > { %p991_p6 = pneg %p990_p7 }
  0x32   : > { %p997_p11 = por %p996_p9, %p995_p4 }
  0x34   : > { %p998_p10 = pnand %p997_p11, %p991_p6 }
  0x36   : > { %1001 = shalt.err (!%p998_p10)
}
  0x37   : > { %s1092_s16 = smov 128   ;;  %s1093_s6 = smov 8  }
  0x38   : > { %858 = dma.hbm_to_vmem [thread:$0]  (!%p1232_p2), %s232_s12, 512, %s234_s14, %s221_s3, %s1092_s16, %s1092_s16, %s1093_s6  }
  0x39   : > { %245 = sbr.rel (%p1182_p8) target bundleno = 508 (0x1fc), region = 40  ;;  %s1243_s25 = sand.u32 (!%p1182_p8), 1, %s1070_s19  }
  0x3a   : > { %s761_s10 = sshll.u32 (!%p1182_p8), %s1243_s25, 5  ;;  %s248_s9 = scalar_lea.sflag (!%p1182_p8), [#allocation4], %s1243_s25 }
  0x3b   : > { %s251_s11 = scalar_lea.vmem (!%p1182_p8), [#allocation3], %s761_s10  ;;  %p1347_p12 = scmp.ne.s32.totalorder (!%p1182_p8), %s1338_s28, 0 }
  0x3e   : > { %1053 = dma.done.wait (%p1347_p12), %s248_s9, 512  }
  0x3f   : > { %1055 = vsyncadd (%p1347_p12), %s248_s9, 4294966784 }
  0x40   : > { %1057 = dma.done.wait (%p1162_p1), [#allocation7], 2048  }
  0x41   : > { %1059 = vsyncadd (%p1162_p1), [#allocation7], 4294965248  ;;  %v1094_v0 = vmov 0   ;;  %v924_v1 = vld [vmem:[%s251_s11 + $0x14] ss:$8 sps:$4 sm:$0xff]   ;;  %v930_v5 = vld [vmem:[%s1328_s1] sm:$0xff]  }
  0x42   : > { %370 = vmatprep.mubr.bf16.mxu0 %v1094_v0  ;;  %923 = vset.pattern.permute.xlu0 %v1094_v0  ;;  %v926_v2 = vld [vmem:[%s251_s11 + $0x10] ss:$8 sps:$4 sm:$0xff]   ;;  %v927_v3 = vld [vmem:[%s251_s11 + $0x4] ss:$8 sps:$4 sm:$0xff]   ;;  %v929_v4 = vld [vmem:[%s251_s11] ss:$8 sps:$4 sm:$0xff]  }
  0x43   : > { %350 = vmatprep.subr.bf16.mxu0 %v924_v1  ;;  %v391_v6 = vld [vmem:[%s1329_s2] sm:$0xff]  ;;  %v392_v7 = vld [vmem:[%s1329_s2 + $0x8] sm:$0xff]  ;;  %v932_v8 = vld [vmem:[#allocation6 + $0x78] sm:$0xff]   ;;  %vm331_vm0 = vcmask 261120   ;;  %s763_s8 = sshll.u32 %s1243_s25, 4  ;;  %s803_s10 = sshll.u32 %s1078_s21, 8 }
  0x44   : > { %351 = vmatpush1.bf16.msra.mxu0 %v926_v2  ;;  %395 = vperm.xlu0 %923, %v391_v6   ;;  %v933_v9 = vld [vmem:[#allocation6 + $0x38] sm:$0xff]   ;;  %v934_v10 = vld [vmem:[#allocation6 + $0x70] sm:$0xff]   ;;  %v936_v12 = vld [vmem:[#allocation6 + $0x68] sm:$0xff]   ;;  %s281_s16 = scalar_lea.vmem [#allocation8], %s763_s8  ;;  %s1279_s3 = scalar_lea.hbm %s1332_s5, %s803_s10 }
  0x45   : > { %352 = vmatprep.subr.bf16.mxu0 %v927_v3  ;;  %815 = vmatprep.subr.bf16.mxu1 %v932_v8  ;;  %v935_v11 = vld [vmem:[#allocation6 + $0x30] sm:$0xff]   ;;  %v931_v13 = vld [vmem:[%s1328_s1 + $0x8] sm:$0xff]   ;;  %v938_v15 = vld [vmem:[#allocation6 + $0x60] sm:$0xff]   ;;  %s656_s6 = sshll.u32 %s281_s16, 4  ;;  %s643_s30 = scalar_lea.sflag [#allocation5], %s1243_s25  ;;  %s1274_s6 = int_to_ptr.vmem [resolvable:$true] %s656_s6 }
  0x46   : > { %816 = vmatpush3.bf16.msra.mxu1 %v933_v9  ;;  %v937_v14 = vld [vmem:[#allocation6 + $0x28] sm:$0xff]   ;;  %v939_v16 = vld [vmem:[#allocation6 + $0x20] sm:$0xff]   ;;  %v940_v17 = vld [vmem:[#allocation6 + $0x58] sm:$0xff]   ;;  %s1002_s28 = scalar_lea.vmem %s1274_s6, 256  ;;  %s1095_s21 = smov [#allocation8]  }
  0x47   : > { %817 = vmatprep.subr.bf16.mxu1 %v934_v10  ;;  %v941_v18 = vld [vmem:[#allocation6 + $0x18] sm:$0xff]   ;;  %v942_v19 = vld [vmem:[#allocation6 + $0x50] sm:$0xff]   ;;  %v944_v21 = vld [vmem:[#allocation6 + $0x48] sm:$0xff]   ;;  %p1003_p1 = scmp.ne.s32.totalorder %s1274_s6, %s1002_s28  ;;  %s1006_s12 = sshll.u32 %s1095_s21, 4  ;;  %s1007_s12 = int_to_ptr.vmem [resolvable:$false] %s1006_s12 }
  0x48   : > { %353 = vmatpush1.bf16.msra.mxu0 %v929_v4  ;;  %400 = vperm.xlu0 %923, %v392_v7   ;;  %v943_v20 = vld [vmem:[#allocation6 + $0x10] sm:$0xff]   ;;  %v945_v22 = vld [vmem:[#allocation6 + $0x8] sm:$0xff]   ;;  %v946_v23 = vld [vmem:[#allocation6 + $0x40] sm:$0xff]   ;;  %s1008_s26 = scalar_lea.vmem %s1007_s12, 512  ;;  %p1009_p0 = scmp.lt.s32.totalorder %s1274_s6, %s1007_s12 }
  0x49   : > { %v947_v24 = vld [vmem:[#allocation6] sm:$0xff]   ;;  %p1004_p8 = pnand %p1003_p1, %p1215_p13  ;;  %p1010_p2 = scmp.lt.s32.totalorder %s1008_s26, %s1002_s28 }
  0x4a   : > { %818 = vmatpush3.bf16.msra.mxu1 %v935_v11  ;;  %v788_v51 = vld [vmem:[%s1331_s4] ss:$0 sm:$0xff] }
  0x4b   : > { %770 = vmatmul.mubr.msk.bf16.vlgmr.msra.gmra.mxu0 %vm331_vm0, %v930_v5  ;;  %819 = vmatprep.subr.bf16.mxu1 %v936_v12  ;;  %p1005_p10 = pneg %p1004_p8  ;;  %p1011_p3 = por %p1010_p2, %p1009_p0 }
  0x4c   : > { %380 = vmatprep.mubr.bf16.mxu0 %v1094_v0 }
  0x4d   : > { %p1012_p5 = pnand %p1011_p3, %p1005_p10 }
  0x4e   : > { %820 = vmatpush3.bf16.msra.mxu1 %v937_v14 }
  0x4f   : > { %821 = vmatprep.subr.bf16.mxu1 %v938_v15 }
  0x52   : > { %822 = vmatpush3.bf16.msra.mxu1 %v939_v16 }
  0x53   : > { %771 = vmatmul.mubr.msk.bf16.gmra.mxu0 %vm331_vm0, %v931_v13  ;;  %823 = vmatprep.subr.bf16.mxu1 %v940_v17 }
  0x56   : > { %824 = vmatpush3.bf16.msra.mxu1 %v941_v18 }
  0x57   : > { %825 = vmatprep.subr.bf16.mxu1 %v942_v19 }
  0x5a   : > { %826 = vmatpush3.bf16.msra.mxu1 %v943_v20 }
  0x5b   : > { %827 = vmatprep.subr.bf16.mxu1 %v944_v21 }
  0x5e   : > { %828 = vmatpush3.bf16.msra.mxu1 %v945_v22 }
  0x5f   : > { %829 = vmatprep.subr.bf16.mxu1 %v946_v23 }
  0x62   : > { %830 = vmatpush3.bf16.msra.mxu1 %v947_v24 }
  0xbf   : > { %v396_v25 = vpop.permute.xlu0 %395 }
  0xc3   : > { %v401_v28 = vpop.permute.xlu0 %400 }
 0x10b   : > { %v372_v26 = vpop.f32.mrf.mxu0 }
 0x10c   : > { %v403_v32 = vadd.f32 %v396_v25, %v372_v26 }
 0x10d   : > { %v374_v27 = vpop.f32.mrf.mxu0 }
 0x10e   : > { %v404_v30 = vadd.f32 %v396_v25, %v374_v27  ;;  %v407_v39 = vmax.f32 %v403_v32, 0.0 }
 0x10f   : > { %v376_v29 = vpop.f32.mrf.mxu0 }
 0x110   : > { %v405_v31 = vadd.f32 %v401_v28, %v376_v29  ;;  %v408_v37 = vmax.f32 %v404_v30, 0.0 }
 0x111   : > { %v378_v33 = vpop.f32.mrf.mxu0 }
 0x112   : > { %v406_v34 = vadd.f32 %v401_v28, %v378_v33  ;;  %v409_v35 = vmax.f32 %v405_v31, 0.0 }
 0x113   : > { %v382_v36 = vpop.f32.mrf.mxu0 }
 0x114   : > { %v410_v38 = vmax.f32 %v406_v34, 0.0  ;;  %v411_v42 = vpack.c.bf16 %v409_v35, %v407_v39 }
 0x115   : > { %v384_v40 = vpop.f32.mrf.mxu0 }
 0x116   : > { %v412_v41 = vpack.c.bf16 %v410_v38, %v408_v37 }
 0x117   : > { %v386_v43 = vpop.f32.mrf.mxu0 }
 0x118   : > { %579 = vmatprep.mubr.bf16.mxu1 %v412_v41  ;;  %v413_v46 = vpack.c.bf16 %v386_v43, %v382_v36 }
 0x119   : > { %v388_v44 = vpop.f32.mrf.mxu0  ;;  %580 = vmatmul.mubr.bf16.vlgmr.msra.gmra.mxu1 %v411_v42 }
 0x11a   : > { %v414_v45 = vpack.c.bf16 %v388_v44, %v384_v40 }
 0x11c   : > { %587 = vmatprep.mubr.bf16.mxu1 %v414_v45 }
 0x121   : > { %588 = vmatmul.mubr.bf16.gmra.mxu1 %v413_v46 }
 0x1d9   : > { %v831_v47 = vpop.f32.mrf.mxu1 }
 0x1db   : > { %v832_v48 = vpop.f32.mrf.mxu1 }
 0x1dc   : > { %v833_v50 = vadd.f32 %v832_v48, %v831_v47 }
 0x1dd   : > { %v834_v49 = vpop.f32.mrf.mxu1 }
 0x1de   : > { %v618_v55 = vmul.f32 %v833_v50, %v788_v51 }
 0x1df   : > { %v835_v52 = vpop.f32.mrf.mxu1 }
 0x1e0   : > { %v836_v53 = vadd.f32 %v835_v52, %v834_v49 }
 0x1e1   : > { %v837_v54 = vpop.f32.mrf.mxu1 }
 0x1e2   : > { %v619_v56 = vmul.f32 %v836_v53, %v788_v51 }
 0x1e3   : > { %v838_v57 = vpop.f32.mrf.mxu1 }
 0x1e4   : > { %v807_v58 = vpack.c.bf16 %v619_v56, %v618_v55  ;;  %v839_v60 = vadd.f32 %v838_v57, %v837_v54 }
 0x1e5   : > { %v840_v59 = vpop.f32.mrf.mxu1 }
 0x1e6   : > { %808 = vst [vmem:[%s281_s16] sm:$0xff] %v807_v58   ;;  %v620_v63 = vmul.f32 %v839_v60, %v788_v51 }
 0x1e7   : > { %v841_v61 = vpop.f32.mrf.mxu1 }
 0x1e8   : > { %v842_v62 = vadd.f32 %v841_v61, %v840_v59 }
 0x1ea   : > { %v621_v0 = vmul.f32 %v842_v62, %v788_v51 }
 0x1ec   : > { %v812_v1 = vpack.c.bf16 %v621_v0, %v620_v63 }
 0x1ee   : > { %814 = vst [vmem:[%s281_s16 + $0x8] sm:$0xff] %v812_v1  }
 0x1ef   : > { %1015 = shalt.err (!%p1012_p5)
}
 0x1f0   : > { %s1016_s13 = scalar_lea.hbm %s1279_s3, 256  ;;  %s1020_s24 = scalar_lea.hbm %s1332_s5, 512 }
 0x1f1   : > { %p1017_p7 = scmp.ne.s32.totalorder %s1279_s3, %s1016_s13  ;;  %p1021_p9 = scmp.lt.s32.totalorder %s1279_s3, %s1332_s5 }
 0x1f2   : > { %p1022_p11 = scmp.lt.s32.totalorder %s1020_s24, %s1016_s13 }
 0x1f3   : > { %p1018_p6 = pnand %p1017_p7, %p1215_p13 }
 0x1f4   : > { %p1023_p12 = por %p1022_p11, %p1021_p9 }
 0x1f5   : > { %p1019_p4 = pneg %p1018_p6 }
 0x1f7   : > { %p1024_p1 = pnand %p1023_p12, %p1019_p4 }
 0x1f9   : > { %1027 = shalt.err (!%p1024_p1)
}
 0x1fa   : > { %s1096_s16 = smov 64   ;;  %s1097_s10 = smov 4  }
 0x1fb   : > { %849 = dma.vmem_to_hbm [thread:$0]  (%p1215_p13), %s1274_s6, 256, %s1279_s3, %s643_s30, %s1096_s16, %s1096_s16, %s1097_s10  }
 0x1fc PF: > { %s671_s9 = sand.u32 1, %s1066_s18   ;;  %p1348_p8 = scmp.ne.s32.totalorder %s1339_s29, 0 }
 0x1fd   : > { %p1349_p10 = scmp.ge.s32.totalorder %s1086_s23, 2  ;;  %s672_s11 = scalar_lea.sflag [#allocation5], %s671_s9 }
 0x1ff   : > { %p860_p0 = pnand %p1349_p10, %p1348_p8 }
 0x201   : > { %p861_p2 = pneg %p860_p0 }
 0x203   : > { %1061 = dma.done.wait (%p861_p2), %s672_s11, 256  }
 0x204   : > { %1063 = vsyncadd (%p861_p2), %s672_s11, 4294967040  ;;  %s22_s23 = sadd.s32 1, %s1086_s23   ;;  %s1350_s17 = sld [smem:[#allocation12_spill]] }
 0x205   : > { %p19_p3 = scmp.ge.s32.totalorder %s22_s23, 4   ;;  %s1351_s18 = smov %s1070_s19 }
 0x206   : > { %s1352_s19 = smov %s1074_s20  ;;  %s1353_s20 = smov %s1224_s7 }
 0x207   : > { %s1354_s21 = smov %s1082_s22  ;;  %21 = sbr.rel (!%p19_p3) target bundleno = 9 (0x9), region = 98 }
 0x20a   : > { %s1355_s22 = smov %s1350_s17 }
 0x20c   :  { %677 = vsyncpa [#allocation4], 1 }
 0x20d   :  { %679 = vsyncpa [#allocation4 + $0x1], 1 }
 0x20e   :  { %680 = vsyncpa [#allocation7], 1 }
 0x20f   :  { %681 = vsyncpa [#allocation5], 1 }
 0x210   :  { %683 = vsyncpa [#allocation5 + $0x1], 1 }

</bundles_post_ra>
